<compile_context>
chip_gen: v7x
topology: tpu7x:2x2x1
jax: 0.10.0
libtpu: 0.0.40
codegen_flags: <defaults>
</compile_context>

<pallas_src>
import functools

import jax
import jax.numpy as jnp
from jax.experimental import pallas as pl
from jax.experimental.pallas import tpu as pltpu

OB_SIZE = 16          # in_features  (ob_size)
AC_SIZE = 4           # num_actions  (ac_size)
HIDDEN = (256, 128, 64, 32)
LANE = 128            # every sub-128 layer width is padded to one full lane width
MAX_TILE_B = 2048     # rows per grid step for big replay batches


def _round_up(n, m):
    return ((n + m - 1) // m) * m


def _tile_b_for(batch):
    """Batch-tile rows: multiple of 16 (bf16 sublanes); >=2 grid steps when it pays."""
    b16 = max(16, _round_up(batch, 16))
    if b16 <= 32:
        return b16                                   # tiny batch: one tile, splitting gains nothing
    half = _round_up(-(-b16 // 2), 16)               # round_up(cdiv(b16, 2), 16)
    return min(MAX_TILE_B, half)                     # guarantees >= 2 grid steps (v7x: 2 TCs)


def _dqn_kernel(x_ref,
                w1_ref, b1_ref,
                w2_ref, b2_ref,
                w3_ref, b3_ref,
                w4_ref, b4_ref,
                w5_ref, b5_ref,
                o_ref):
    """One batch tile of the fused 5-layer MLP (all layer widths 128-lane padded)."""
    # f32 tile from HBM, cast to bf16 on the VPU (hides under the layer-1 matmul).
    h = x_ref[...].astype(jnp.bfloat16)                       # (TILE_B, 16)

    def hidden_layer(h, w_ref, b_ref):
        acc = jnp.dot(h, w_ref[...], preferred_element_type=jnp.float32)
        return jnp.maximum(acc + b_ref[...], 0.0).astype(jnp.bfloat16)

    h = hidden_layer(h, w1_ref, b1_ref)                       # (TILE_B, 256)
    h = hidden_layer(h, w2_ref, b2_ref)                       # (TILE_B, 128)
    h = hidden_layer(h, w3_ref, b3_ref)                       # (TILE_B, 128)  (true 64, zero-padded)
    h = hidden_layer(h, w4_ref, b4_ref)                       # (TILE_B, 128)  (true 32, zero-padded)
    # fc5: no activation, lane-dense f32 store of the 128-lane padded output.
    acc = jnp.dot(h, w5_ref[...], preferred_element_type=jnp.float32)
    o_ref[...] = (acc + b5_ref[...]).astype(o_ref.dtype)


@functools.partial(jax.jit, static_argnames=("num_actions",))
def dqn_forward(x, params, num_actions=AC_SIZE):
    """x: [B, OB_SIZE] float32.  params: pre-padded flat tuple (w1,b1,...,w5,b5),
    weights [in_pad, out_pad] bf16, biases [1, out_pad] f32 (see init_dqn_params)."""
    B = x.shape[0]

    tile_b = _tile_b_for(B)
    b_pad = pl.cdiv(B, tile_b) * tile_b
    x_p = x if b_pad == B else jnp.pad(x, ((0, b_pad - B), (0, 0)))

    grid = (b_pad // tile_b,)

    in_specs = [pl.BlockSpec((tile_b, OB_SIZE), lambda i: (i, 0))]
    # Weights / biases: full-array blocks, constant index_map -> VMEM-resident.
    for p in params:
        in_specs.append(pl.BlockSpec(p.shape, lambda i: (0, 0)))

    # Advisory cost based on what the kernel actually computes (padded widths).
    pad_dims = (OB_SIZE, 256, 128, 128, 128, LANE)
    flops = 2 * b_pad * sum(a * b for a, b in zip(pad_dims[:-1], pad_dims[1:]))
    bytes_accessed = (int(x_p.size) * 4                      # f32 input tiles
                      + b_pad * LANE * 4                     # f32 padded output
                      + sum(int(p.size) * p.dtype.itemsize for p in params))
    cost = pl.CostEstimate(flops=flops, transcendentals=0,
                           bytes_accessed=bytes_accessed)

    out = pl.pallas_call(
        _dqn_kernel,
        out_shape=jax.ShapeDtypeStruct((b_pad, LANE), jnp.float32),
        grid=grid,
        in_specs=in_specs,
        out_specs=pl.BlockSpec((tile_b, LANE), lambda i: (i, 0)),
        compiler_params=pltpu.CompilerParams(
            dimension_semantics=("parallel",),       # batch tiles shard across v7x's 2 TCs
            vmem_limit_bytes=32 * 1024 * 1024),      # footprint < ~10 MiB even at tile 2048
        cost_estimate=cost,
    )(x_p, *params)

    return out[:B, :num_actions]


def init_dqn_params(key, in_features=OB_SIZE, num_actions=AC_SIZE):
    """nn.Linear-style U(-1/sqrt(fan_in), 1/sqrt(fan_in)) init on the TRUE dims,
    then zero-padded once so every hidden/output width below 128 becomes 128.
    Weights stored [in_pad, out_pad] (transposed vs. PyTorch) in bf16; biases [1, out_pad] f32."""
    true_dims = (in_features,) + HIDDEN + (num_actions,)
    pad_dims = (in_features,) + tuple(max(d, LANE) for d in HIDDEN + (num_actions,))
    params = []
    for i in range(len(true_dims) - 1):
        fi, fo = true_dims[i], true_dims[i + 1]
        pi, po = pad_dims[i], pad_dims[i + 1]
        key, kw, kb = jax.random.split(key, 3)
        bound = 1.0 / (fi ** 0.5)
        w = jax.random.uniform(kw, (fi, fo), jnp.float32, -bound, bound)
        b = jax.random.uniform(kb, (1, fo), jnp.float32, -bound, bound)
        # Zero padding: padded K-rows and padded N-cols (bias 0 -> ReLU(0)=0) change nothing.
        w = jnp.pad(w, ((0, pi - fi), (0, po - fo)))
        b = jnp.pad(b, ((0, 0), (0, po - fo)))
        params.extend([w.astype(jnp.bfloat16), b])
    return tuple(params)


@functools.partial(jax.jit, static_argnames=("num_actions",))
def dqn_reference(x, params, num_actions=AC_SIZE):
    """Pure-JAX reference with the same bf16-matmul / f32-accumulate recipe."""
    h = x.astype(jnp.bfloat16)
    for i in range(0, len(params) - 2, 2):
        acc = jnp.dot(h, params[i], preferred_element_type=jnp.float32)
        h = jnp.maximum(acc + params[i + 1], 0.0).astype(jnp.bfloat16)
    out = jnp.dot(h, params[-2], preferred_element_type=jnp.float32) + params[-1]
    return out[:, :num_actions]


if __name__ == "__main__":
    key = jax.random.PRNGKey(0)
    key, kx1, kx2 = jax.random.split(key, 3)
    params = init_dqn_params(key)

    # Small inference-style batch (single 16-row tile, one grid step).
    B_small = 8
    x_small = jax.random.normal(kx1, (B_small, OB_SIZE), jnp.float32)
    out_small = jax.block_until_ready(dqn_forward(x_small, params, num_actions=AC_SIZE))
    ref_small = dqn_reference(x_small, params, num_actions=AC_SIZE)
    assert out_small.shape == (B_small, AC_SIZE)
    assert jnp.allclose(out_small, ref_small, atol=2e-3, rtol=2e-3), "small-batch mismatch"

    # Larger replay-buffer-style batch: exercises padding, tiling and the >=2-step grid.
    B_big = 1000
    x_big = jax.random.normal(kx2, (B_big, OB_SIZE), jnp.float32)
    out_big = jax.block_until_ready(dqn_forward(x_big, params, num_actions=AC_SIZE))
    ref_big = dqn_reference(x_big, params, num_actions=AC_SIZE)
    assert out_big.shape == (B_big, AC_SIZE)
    assert jnp.allclose(out_big, ref_big, atol=2e-3, rtol=2e-3), "large-batch mismatch"

    print("KERNEL_OK")
</pallas_src>

<mosaic_0001>
module attributes {stable_mosaic.version = 11 : i64} {
  func.func @_dqn_kernel(%arg0: i32, %arg1: memref<16x16xf32, #tpu.memory_space<vmem>>, %arg2: memref<16x256xbf16, #tpu.memory_space<vmem>>, %arg3: memref<1x256xf32, #tpu.memory_space<vmem>>, %arg4: memref<256x128xbf16, #tpu.memory_space<vmem>>, %arg5: memref<1x128xf32, #tpu.memory_space<vmem>>, %arg6: memref<128x128xbf16, #tpu.memory_space<vmem>>, %arg7: memref<1x128xf32, #tpu.memory_space<vmem>>, %arg8: memref<128x128xbf16, #tpu.memory_space<vmem>>, %arg9: memref<1x128xf32, #tpu.memory_space<vmem>>, %arg10: memref<128x128xbf16, #tpu.memory_space<vmem>>, %arg11: memref<1x128xf32, #tpu.memory_space<vmem>>, %arg12: memref<16x128xf32, #tpu.memory_space<vmem>>) attributes {dimension_semantics = [#tpu.dimension_semantics<parallel>], iteration_bounds = array<i64: 1>, scalar_prefetch = 0 : i64, scratch_operands = 0 : i64, tpu.core_type = #tpu.core_type<tc>, window_params = [{transform_indices = @transform_0, window_bounds = array<i64: 16, 16>}, {pipeline_mode = #tpu.pipeline_mode<synchronous>, transform_indices = @transform_1, window_bounds = array<i64: 16, 256>}, {pipeline_mode = #tpu.pipeline_mode<synchronous>, transform_indices = @transform_2, window_bounds = array<i64: 1, 256>}, {pipeline_mode = #tpu.pipeline_mode<synchronous>, transform_indices = @transform_3, window_bounds = array<i64: 256, 128>}, {pipeline_mode = #tpu.pipeline_mode<synchronous>, transform_indices = @transform_4, window_bounds = array<i64: 1, 128>}, {pipeline_mode = #tpu.pipeline_mode<synchronous>, transform_indices = @transform_5, window_bounds = array<i64: 128, 128>}, {pipeline_mode = #tpu.pipeline_mode<synchronous>, transform_indices = @transform_6, window_bounds = array<i64: 1, 128>}, {pipeline_mode = #tpu.pipeline_mode<synchronous>, transform_indices = @transform_7, window_bounds = array<i64: 128, 128>}, {pipeline_mode = #tpu.pipeline_mode<synchronous>, transform_indices = @transform_8, window_bounds = array<i64: 1, 128>}, {pipeline_mode = #tpu.pipeline_mode<synchronous>, transform_indices = @transform_9, window_bounds = array<i64: 128, 128>}, {pipeline_mode = #tpu.pipeline_mode<synchronous>, transform_indices = @transform_10, window_bounds = array<i64: 1, 128>}, {transform_indices = @transform_11, window_bounds = array<i64: 16, 128>}]} {
    %c0 = arith.constant 0 : index
    %c0_0 = arith.constant 0 : index
    %0 = vector.load %arg1[%c0, %c0_0] : memref<16x16xf32, #tpu.memory_space<vmem>>, vector<16x16xf32>
    %1 = arith.truncf %0 : vector<16x16xf32> to vector<16x16xbf16>
    %c0_1 = arith.constant 0 : index
    %c0_2 = arith.constant 0 : index
    %2 = vector.load %arg2[%c0_1, %c0_2] : memref<16x256xbf16, #tpu.memory_space<vmem>>, vector<16x256xbf16>
    %cst = arith.constant dense<0.000000e+00> : vector<16x256xf32>
    %3 = tpu.matmul %1, %2, %cst {dimension_numbers = #tpu.dot_dimension_numbers<[1], [0], [0], [1], [0, 0, 1, 1], [], []>} : vector<16x16xbf16>, vector<16x256xbf16>, vector<16x256xf32> -> vector<16x256xf32>
    %c0_3 = arith.constant 0 : index
    %c0_4 = arith.constant 0 : index
    %4 = vector.load %arg3[%c0_3, %c0_4] : memref<1x256xf32, #tpu.memory_space<vmem>>, vector<1x256xf32>
    %5 = vector.broadcast %4 : vector<1x256xf32> to vector<16x256xf32>
    %6 = arith.addf %3, %5 : vector<16x256xf32>
    %cst_5 = arith.constant 0.000000e+00 : f32
    %7 = vector.broadcast %cst_5 : f32 to vector<16x256xf32>
    %8 = arith.maximumf %6, %7 : vector<16x256xf32>
    %9 = arith.truncf %8 : vector<16x256xf32> to vector<16x256xbf16>
    %c0_6 = arith.constant 0 : index
    %c0_7 = arith.constant 0 : index
    %10 = vector.load %arg4[%c0_6, %c0_7] : memref<256x128xbf16, #tpu.memory_space<vmem>>, vector<256x128xbf16>
    %cst_8 = arith.constant dense<0.000000e+00> : vector<16x128xf32>
    %11 = tpu.matmul %9, %10, %cst_8 {dimension_numbers = #tpu.dot_dimension_numbers<[1], [0], [0], [1], [0, 0, 1, 1], [], []>} : vector<16x256xbf16>, vector<256x128xbf16>, vector<16x128xf32> -> vector<16x128xf32>
    %c0_9 = arith.constant 0 : index
    %c0_10 = arith.constant 0 : index
    %12 = vector.load %arg5[%c0_9, %c0_10] : memref<1x128xf32, #tpu.memory_space<vmem>>, vector<1x128xf32>
    %13 = vector.broadcast %12 : vector<1x128xf32> to vector<16x128xf32>
    %14 = arith.addf %11, %13 : vector<16x128xf32>
    %cst_11 = arith.constant 0.000000e+00 : f32
    %15 = vector.broadcast %cst_11 : f32 to vector<16x128xf32>
    %16 = arith.maximumf %14, %15 : vector<16x128xf32>
    %17 = arith.truncf %16 : vector<16x128xf32> to vector<16x128xbf16>
    %c0_12 = arith.constant 0 : index
    %c0_13 = arith.constant 0 : index
    %18 = vector.load %arg6[%c0_12, %c0_13] : memref<128x128xbf16, #tpu.memory_space<vmem>>, vector<128x128xbf16>
    %cst_14 = arith.constant dense<0.000000e+00> : vector<16x128xf32>
    %19 = tpu.matmul %17, %18, %cst_14 {dimension_numbers = #tpu.dot_dimension_numbers<[1], [0], [0], [1], [0, 0, 1, 1], [], []>} : vector<16x128xbf16>, vector<128x128xbf16>, vector<16x128xf32> -> vector<16x128xf32>
    %c0_15 = arith.constant 0 : index
    %c0_16 = arith.constant 0 : index
    %20 = vector.load %arg7[%c0_15, %c0_16] : memref<1x128xf32, #tpu.memory_space<vmem>>, vector<1x128xf32>
    %21 = vector.broadcast %20 : vector<1x128xf32> to vector<16x128xf32>
    %22 = arith.addf %19, %21 : vector<16x128xf32>
    %cst_17 = arith.constant 0.000000e+00 : f32
    %23 = vector.broadcast %cst_17 : f32 to vector<16x128xf32>
    %24 = arith.maximumf %22, %23 : vector<16x128xf32>
    %25 = arith.truncf %24 : vector<16x128xf32> to vector<16x128xbf16>
    %c0_18 = arith.constant 0 : index
    %c0_19 = arith.constant 0 : index
    %26 = vector.load %arg8[%c0_18, %c0_19] : memref<128x128xbf16, #tpu.memory_space<vmem>>, vector<128x128xbf16>
    %cst_20 = arith.constant dense<0.000000e+00> : vector<16x128xf32>
    %27 = tpu.matmul %25, %26, %cst_20 {dimension_numbers = #tpu.dot_dimension_numbers<[1], [0], [0], [1], [0, 0, 1, 1], [], []>} : vector<16x128xbf16>, vector<128x128xbf16>, vector<16x128xf32> -> vector<16x128xf32>
    %c0_21 = arith.constant 0 : index
    %c0_22 = arith.constant 0 : index
    %28 = vector.load %arg9[%c0_21, %c0_22] : memref<1x128xf32, #tpu.memory_space<vmem>>, vector<1x128xf32>
    %29 = vector.broadcast %28 : vector<1x128xf32> to vector<16x128xf32>
    %30 = arith.addf %27, %29 : vector<16x128xf32>
    %cst_23 = arith.constant 0.000000e+00 : f32
    %31 = vector.broadcast %cst_23 : f32 to vector<16x128xf32>
    %32 = arith.maximumf %30, %31 : vector<16x128xf32>
    %33 = arith.truncf %32 : vector<16x128xf32> to vector<16x128xbf16>
    %c0_24 = arith.constant 0 : index
    %c0_25 = arith.constant 0 : index
    %34 = vector.load %arg10[%c0_24, %c0_25] : memref<128x128xbf16, #tpu.memory_space<vmem>>, vector<128x128xbf16>
    %cst_26 = arith.constant dense<0.000000e+00> : vector<16x128xf32>
    %35 = tpu.matmul %33, %34, %cst_26 {dimension_numbers = #tpu.dot_dimension_numbers<[1], [0], [0], [1], [0, 0, 1, 1], [], []>} : vector<16x128xbf16>, vector<128x128xbf16>, vector<16x128xf32> -> vector<16x128xf32>
    %c0_27 = arith.constant 0 : index
    %c0_28 = arith.constant 0 : index
    %36 = vector.load %arg11[%c0_27, %c0_28] : memref<1x128xf32, #tpu.memory_space<vmem>>, vector<1x128xf32>
    %37 = vector.broadcast %36 : vector<1x128xf32> to vector<16x128xf32>
    %38 = arith.addf %35, %37 : vector<16x128xf32>
    %c0_29 = arith.constant 0 : index
    %c0_30 = arith.constant 0 : index
    %39 = vector.load %arg12[%c0_29, %c0_30] : memref<16x128xf32, #tpu.memory_space<vmem>>, vector<16x128xf32>
    tpu.vector_store %arg12[%c0_29, %c0_30], %38 {strides = array<i32>} : memref<16x128xf32, #tpu.memory_space<vmem>>, vector<16x128xf32>,
    return
  }
  func.func @transform_0(%arg0: i32) -> (i32, i32) {
    %c0_i32 = arith.constant 0 : i32
    %c0_i32_0 = arith.constant 0 : i32
    return %arg0, %c0_i32 : i32, i32
  }
  func.func @transform_1(%arg0: i32) -> (i32, i32) {
    %c0_i32 = arith.constant 0 : i32
    %c0_i32_0 = arith.constant 0 : i32
    %c0_i32_1 = arith.constant 0 : i32
    return %c0_i32, %c0_i32_0 : i32, i32
  }
  func.func @transform_2(%arg0: i32) -> (i32, i32) {
    %c0_i32 = arith.constant 0 : i32
    %c0_i32_0 = arith.constant 0 : i32
    %c0_i32_1 = arith.constant 0 : i32
    return %c0_i32, %c0_i32_0 : i32, i32
  }
  func.func @transform_3(%arg0: i32) -> (i32, i32) {
    %c0_i32 = arith.constant 0 : i32
    %c0_i32_0 = arith.constant 0 : i32
    %c0_i32_1 = arith.constant 0 : i32
    return %c0_i32, %c0_i32_0 : i32, i32
  }
  func.func @transform_4(%arg0: i32) -> (i32, i32) {
    %c0_i32 = arith.constant 0 : i32
    %c0_i32_0 = arith.constant 0 : i32
    %c0_i32_1 = arith.constant 0 : i32
    return %c0_i32, %c0_i32_0 : i32, i32
  }
  func.func @transform_5(%arg0: i32) -> (i32, i32) {
    %c0_i32 = arith.constant 0 : i32
    %c0_i32_0 = arith.constant 0 : i32
    %c0_i32_1 = arith.constant 0 : i32
    return %c0_i32, %c0_i32_0 : i32, i32
  }
  func.func @transform_6(%arg0: i32) -> (i32, i32) {
    %c0_i32 = arith.constant 0 : i32
    %c0_i32_0 = arith.constant 0 : i32
    %c0_i32_1 = arith.constant 0 : i32
    return %c0_i32, %c0_i32_0 : i32, i32
  }
  func.func @transform_7(%arg0: i32) -> (i32, i32) {
    %c0_i32 = arith.constant 0 : i32
    %c0_i32_0 = arith.constant 0 : i32
    %c0_i32_1 = arith.constant 0 : i32
    return %c0_i32, %c0_i32_0 : i32, i32
  }
  func.func @transform_8(%arg0: i32) -> (i32, i32) {
    %c0_i32 = arith.constant 0 : i32
    %c0_i32_0 = arith.constant 0 : i32
    %c0_i32_1 = arith.constant 0 : i32
    return %c0_i32, %c0_i32_0 : i32, i32
  }
  func.func @transform_9(%arg0: i32) -> (i32, i32) {
    %c0_i32 = arith.constant 0 : i32
    %c0_i32_0 = arith.constant 0 : i32
    %c0_i32_1 = arith.constant 0 : i32
    return %c0_i32, %c0_i32_0 : i32, i32
  }
  func.func @transform_10(%arg0: i32) -> (i32, i32) {
    %c0_i32 = arith.constant 0 : i32
    %c0_i32_0 = arith.constant 0 : i32
    %c0_i32_1 = arith.constant 0 : i32
    return %c0_i32, %c0_i32_0 : i32, i32
  }
  func.func @transform_11(%arg0: i32) -> (i32, i32) {
    %c0_i32 = arith.constant 0 : i32
    %c0_i32_0 = arith.constant 0 : i32
    return %arg0, %c0_i32 : i32, i32
  }
}

</mosaic_0001>

<bundles_post_ra>
// kernel: dqn_forward.1
= control target key start
LH: loop header
LB: loop body
LE: loop exit
PB: predicated region body
PF: predicated region fallthrough
CT: control target
= control target key end

     0   :  { %16 = vsyncpa [#allocation3], 0  ;;  %s1212_s0 = inlined_call_operand.vmem [shape: f32[16,16], index: 0, kind: input, shape index: {}]   ;;  %s1213_s1 = inlined_call_operand.vmem [shape: bf16[16,256], index: 1, kind: input, shape index: {}]   ;;  %s1214_s2 = inlined_call_operand.vmem [shape: f32[1,256], index: 2, kind: input, shape index: {}]   ;;  %s1215_s3 = inlined_call_operand.hbm [shape: bf16[256,128], index: 3, kind: input, shape index: {}]   ;;  %s1216_s4 = inlined_call_operand.vmem [shape: f32[1,128], index: 4, kind: input, shape index: {}]   ;;  %s1217_s5 = inlined_call_operand.hbm [shape: bf16[128,128], index: 5, kind: input, shape index: {}]   ;;  %s1218_s6 = inlined_call_operand.vmem [shape: f32[1,128], index: 6, kind: input, shape index: {}]   ;;  %s1219_s7 = inlined_call_operand.hbm [shape: bf16[128,128], index: 7, kind: input, shape index: {}]   ;;  %s1220_s8 = inlined_call_operand.vmem [shape: f32[1,128], index: 8, kind: input, shape index: {}]   ;;  %s1221_s9 = inlined_call_operand.hbm [shape: bf16[128,128], index: 9, kind: input, shape index: {}]   ;;  %s1222_s10 = inlined_call_operand.vmem [shape: f32[1,128], index: 10, kind: input, shape index: {}]   ;;  %s1223_s11 = inlined_call_operand.vmem [shape: f32[16,128], index: 11, kind: output, shape index: {}]  }
   0x1   :  { %17 = vsyncpa [#allocation5], 0 }
   0x2   :  { %18 = vsyncpa [#allocation8], 0  ;;  %s1006_s17 = smov [#allocation4]   ;;  %s1007_s19 = smov [#allocation2]  }
   0x3   :  { %s44_s18 = sshll.u32 %s1006_s17, 4  ;;  %s30_s20 = sshll.u32 %s1007_s19, 4  ;;  %s45_s18 = int_to_ptr.vmem [resolvable:$true] %s44_s18  ;;  %s1075_s20 = int_to_ptr.vmem [resolvable:$true] %s30_s20 }
   0x4   :  { %s912_s23 = scalar_lea.hbm %s1217_s5, 1024 }
   0x5   :  { %p913_p0 = scmp.ne.s32.totalorder %s1217_s5, %s912_s23  ;;  %p916_p1 = scmp.lt.u32.totalorder %s912_s23, %s1217_s5 }
   0x7   :  { %p918_p2 = pnand %p916_p1, %p913_p0 }
   0x9   :  { %921 = shalt.err (!%p918_p2)
}
   0xa   :  { %s922_s28 = scalar_lea.vmem %s45_s18, 1024  ;;  %p927_p4 = scmp.lt.s32.totalorder %s45_s18, %s45_s18 }
   0xb   :  { %p923_p3 = scmp.ne.s32.totalorder %s45_s18, %s922_s28  ;;  %p928_p5 = scmp.lt.s32.totalorder %s922_s28, %s922_s28 }
   0xd   :  { %p929_p6 = por %p928_p5, %p927_p4 }
   0xf   :  { %p930_p7 = pnand %p929_p6, %p923_p3 }
  0x11   :  { %933 = shalt.err (!%p930_p7)
}
  0x12   :  { %s1008_s29 = smov 64   ;;  %s1009_s30 = smov 4  }
  0x13   :  { %50 = dma.hbm_to_vmem [thread:$0]  %s1217_s5, 1024, %s45_s18, [#allocation5], %s1008_s29, %s1008_s29, %s1009_s30  }
  0x14   :  { %s934_s16 = scalar_lea.hbm %s1215_s3, 2048 }
  0x15   :  { %p935_p8 = scmp.ne.s32.totalorder %s1215_s3, %s934_s16  ;;  %p938_p9 = scmp.lt.u32.totalorder %s934_s16, %s1215_s3 }
  0x17   :  { %p940_p10 = pnand %p938_p9, %p935_p8 }
  0x19   :  { %943 = shalt.err (!%p940_p10)
}
  0x1a   :  { %s944_s23 = scalar_lea.vmem %s1075_s20, 2048  ;;  %p949_p12 = scmp.lt.s32.totalorder %s1075_s20, %s1075_s20 }
  0x1b   :  { %p945_p11 = scmp.ne.s32.totalorder %s1075_s20, %s944_s23  ;;  %p950_p13 = scmp.lt.s32.totalorder %s944_s23, %s944_s23 }
  0x1d   :  { %p951_p0 = por %p950_p13, %p949_p12 }
  0x1f   :  { %p952_p1 = pnand %p951_p0, %p945_p11 }
  0x21   :  { %955 = shalt.err (!%p952_p1)
}
  0x22   :  { %36 = dma.hbm_to_vmem [thread:$0]  %s1215_s3, 2048, %s1075_s20, [#allocation3], %s1008_s29, %s1008_s29, %s1009_s30  }
  0x23   :  { %s1010_s24 = smov [#allocation6]   ;;  %s1011_s26 = smov [#allocation7]  }
  0x24   :  { %s58_s25 = sshll.u32 %s1010_s24, 4  ;;  %s72_s27 = sshll.u32 %s1011_s26, 4  ;;  %s59_s25 = int_to_ptr.vmem [resolvable:$true] %s58_s25  ;;  %s1112_s27 = int_to_ptr.vmem [resolvable:$true] %s72_s27 }
  0x25   :  { %s956_s13 = scalar_lea.hbm %s1219_s7, 1024 }
  0x26   :  { %p957_p2 = scmp.ne.s32.totalorder %s1219_s7, %s956_s13  ;;  %p960_p3 = scmp.lt.u32.totalorder %s956_s13, %s1219_s7 }
  0x28   :  { %p962_p4 = pnand %p960_p3, %p957_p2 }
  0x2a   :  { %965 = shalt.err (!%p962_p4)
}
  0x2b   :  { %s966_s3 = scalar_lea.vmem %s59_s25, 1024  ;;  %p971_p6 = scmp.lt.s32.totalorder %s59_s25, %s59_s25 }
  0x2c   :  { %p967_p5 = scmp.ne.s32.totalorder %s59_s25, %s966_s3  ;;  %p972_p7 = scmp.lt.s32.totalorder %s966_s3, %s966_s3 }
  0x2e   :  { %p973_p8 = por %p972_p7, %p971_p6 }
  0x30   :  { %p974_p9 = pnand %p973_p8, %p967_p5 }
  0x32   :  { %977 = shalt.err (!%p974_p9)
}
  0x33   :  { %64 = dma.hbm_to_vmem [thread:$0]  %s1219_s7, 1024, %s59_s25, [#allocation5], %s1008_s29, %s1008_s29, %s1009_s30  }
  0x34   :  { %s978_s23 = scalar_lea.hbm %s1221_s9, 1024 }
  0x35   :  { %p979_p10 = scmp.ne.s32.totalorder %s1221_s9, %s978_s23  ;;  %p982_p11 = scmp.lt.u32.totalorder %s978_s23, %s1221_s9 }
  0x37   :  { %p984_p12 = pnand %p982_p11, %p979_p10 }
  0x39   :  { %987 = shalt.err (!%p984_p12)
}
  0x3a   :  { %s988_s28 = scalar_lea.vmem %s1112_s27, 1024  ;;  %p993_p0 = scmp.lt.s32.totalorder %s1112_s27, %s1112_s27 }
  0x3b   :  { %p989_p13 = scmp.ne.s32.totalorder %s1112_s27, %s988_s28  ;;  %p994_p1 = scmp.lt.s32.totalorder %s988_s28, %s988_s28 }
  0x3d   :  { %p995_p2 = por %p994_p1, %p993_p0 }
  0x3f   :  { %p996_p3 = pnand %p995_p2, %p989_p13 }
  0x41   :  { %999 = shalt.err (!%p996_p3)
}
  0x42   :  { %78 = dma.hbm_to_vmem [thread:$0]  %s1221_s9, 1024, %s1112_s27, [#allocation8], %s1008_s29, %s1008_s29, %s1009_s30  }
  0x43   :  { %1000 = dma.done.wait [#allocation3], 2048  }
  0x44   :  { %1001 = vsyncadd [#allocation3], 4294965248 }
  0x45   :  { %1002 = dma.done.wait [#allocation5], 2048  }
  0x46   :  { %1003 = vsyncadd [#allocation5], 4294965248 }
  0x47   :  { %1004 = dma.done.wait [#allocation8], 1024  }
  0x48   :  { %1005 = vsyncadd [#allocation8], 4294966272  ;;  %v1012_v0 = vmov 0   ;;  %v869_v1 = vld [vmem:[%s1213_s1 + $0x4] ss:$8 sps:$4 sm:$0xff]   ;;  %vm121_vm0 = vcmask 130048   ;;  %v101_v28 = vlaneseq }
  0x49   :  { %157 = vmatprep.mubr.bf16.mxu0 %v1012_v0  ;;  %v871_v2 = vld [vmem:[%s1213_s1] ss:$8 sps:$4 sm:$0xff]   ;;  %125 = vmatprep.subr.bf16.mxu0 %v869_v1  ;;  %v876_v10 = vld [vmem:[#allocation2 + $0x50] sm:$0xff]   ;;  %v878_v12 = vld [vmem:[#allocation2 + $0x58] sm:$0xff]   ;;  %v1013_v23 = vmov 0.0   ;;  %vm1014_vm1 = vmmov 0  }
  0x4a   :  { %v94_v3 = vld [vmem:[%s1212_s0] sm:$0xff]  ;;  %v95_v4 = vld [vmem:[%s1212_s0 + $0x8] sm:$0xff]  ;;  %126 = vmatpush1.bf16.msra.mxu0 %v871_v2  ;;  %v877_v11 = vld [vmem:[#allocation2 + $0x10] sm:$0xff]   ;;  %v102_v29 = vshrl.u32 %v101_v28, 7 }
  0x4b   :  { %v96_v5 = vpack.c.bf16 %v95_v4, %v94_v3  ;;  %v872_v6 = vld [vmem:[#allocation2 + $0x40] sm:$0xff]   ;;  %v874_v8 = vld [vmem:[#allocation2 + $0x48] sm:$0xff]   ;;  %v879_v13 = vld [vmem:[#allocation2 + $0x18] sm:$0xff]   ;;  %800 = vmatprep.subr.bf16.mxu0 %v1013_v23 }
  0x4c   :  { %v873_v7 = vld [vmem:[#allocation2] sm:$0xff]   ;;  %751 = vmatprep.subr.bf16.mxu1 %v872_v6  ;;  %v875_v9 = vld [vmem:[#allocation2 + $0x8] sm:$0xff]   ;;  %v884_v18 = vld [vmem:[#allocation2 + $0x70] sm:$0xff]   ;;  %v103_v30 = vsub.s32 0, %v102_v29  ;;  %v107_v32 = vsub.s32 1, %v102_v29 }
  0x4d   :  { %752 = vmatpush3.bf16.msra.mxu1 %v873_v7  ;;  %706 = vmatmul.mubr.msk.bf16.vlgmr.msra.gmra.mrb[0].mxu0 %vm121_vm0, %v96_v5  ;;  %v880_v14 = vld [vmem:[#allocation2 + $0x60] sm:$0xff]   ;;  %v882_v16 = vld [vmem:[#allocation2 + $0x68] sm:$0xff]   ;;  %v885_v19 = vld [vmem:[#allocation2 + $0x30] sm:$0xff]  }
  0x4e   :  { %753 = vmatprep.subr.bf16.mxu1 %v874_v8  ;;  %v881_v15 = vld [vmem:[#allocation2 + $0x20] sm:$0xff]   ;;  %v883_v17 = vld [vmem:[#allocation2 + $0x28] sm:$0xff]   ;;  %v886_v20 = vld [vmem:[#allocation2 + $0x78] sm:$0xff]   ;;  %816 = vmatprep.mubr.msk.bf16.mxu0 %vm1014_vm1, %v1013_v23 }
  0x4f   :  { %v887_v21 = vld [vmem:[#allocation2 + $0x38] sm:$0xff]   ;;  %v888_v22 = vld [vmem:[#allocation4] sm:$0xff]   ;;  %v889_v24 = vld [vmem:[#allocation4 + $0x8] sm:$0xff]  }
  0x50   :  { %801 = vmatpush3.bf16.msra.mxu0 %v888_v22  ;;  %v890_v25 = vld [vmem:[#allocation4 + $0x10] sm:$0xff]   ;;  %v891_v26 = vld [vmem:[#allocation4 + $0x18] sm:$0xff]   ;;  %v892_v27 = vld [vmem:[#allocation4 + $0x20] sm:$0xff]  }
  0x51   :  { %754 = vmatpush3.bf16.msra.mxu1 %v875_v9  ;;  %802 = vmatprep.subr.bf16.mxu0 %v1013_v23  ;;  %v99_v31 = vld [vmem:[%s1214_s2] sm:$0x3]  ;;  %v893_v49 = vld [vmem:[#allocation4 + $0x28] sm:$0xff]   ;;  %v894_v50 = vld [vmem:[#allocation4 + $0x30] sm:$0xff]  }
  0x52   :  { %755 = vmatprep.subr.bf16.mxu1 %v876_v10  ;;  %v104_v33 = vrot.slane %v99_v31, %v103_v30  ;;  %v108_v34 = vrot.slane %v99_v31, %v107_v32  ;;  %v895_v51 = vld [vmem:[#allocation4 + $0x38] sm:$0xff]   ;;  %v896_v52 = vld [vmem:[#allocation6] sm:$0xff]   ;;  %v897_v53 = vld [vmem:[#allocation6 + $0x8] sm:$0xff]  }
  0x53   :  { %v898_v54 = vld [vmem:[#allocation6 + $0x10] sm:$0xff]   ;;  %v899_v55 = vld [vmem:[#allocation6 + $0x18] sm:$0xff]   ;;  %v900_v56 = vld [vmem:[#allocation6 + $0x20] sm:$0xff]  }
  0x54   :  { %803 = vmatpush3.bf16.msra.mxu0 %v889_v24  ;;  %v901_v57 = vld [vmem:[#allocation6 + $0x28] sm:$0xff]   ;;  %v707_v59 = vld [vmem:[%s1216_s4] ss:$0 sm:$0xff]  ;;  %v902_v6 = vld [vmem:[#allocation6 + $0x30] sm:$0xff]  }
  0x55   :  { %756 = vmatpush3.bf16.msra.mxu1 %v877_v11  ;;  %804 = vmatprep.subr.bf16.mxu0 %v1013_v23  ;;  %v903_v7 = vld [vmem:[#allocation6 + $0x38] sm:$0xff]   ;;  %v904_v8 = vld [vmem:[#allocation7] sm:$0xff]   ;;  %v905_v9 = vld [vmem:[#allocation7 + $0x8] sm:$0xff]  }
  0x56   :  { %757 = vmatprep.subr.bf16.mxu1 %v878_v12  ;;  %v906_v10 = vld [vmem:[#allocation7 + $0x10] sm:$0xff]   ;;  %v907_v11 = vld [vmem:[#allocation7 + $0x18] sm:$0xff]   ;;  %v908_v12 = vld [vmem:[#allocation7 + $0x20] sm:$0xff]  }
  0x58   :  { %805 = vmatpush3.bf16.msra.mxu0 %v890_v25  ;;  %v910_v25 = vld [vmem:[#allocation7 + $0x30] sm:$0xff]  }
  0x59   :  { %758 = vmatpush3.bf16.msra.mxu1 %v879_v13  ;;  %806 = vmatprep.subr.bf16.mxu0 %v1013_v23  ;;  %v909_v13 = vld [vmem:[#allocation7 + $0x28] sm:$0xff]  }
  0x5a   :  { %759 = vmatprep.subr.bf16.mxu1 %v880_v14  ;;  %v724_v14 = vld [vmem:[%s1218_s6] ss:$0 sm:$0xff] }
  0x5c   :  { %807 = vmatpush3.bf16.msra.mxu0 %v891_v26  ;;  %v911_v26 = vld [vmem:[#allocation7 + $0x38] sm:$0xff]  }
  0x5d   :  { %760 = vmatpush3.bf16.msra.mxu1 %v881_v15  ;;  %808 = vmatprep.subr.bf16.mxu0 %v1013_v23 }
  0x5e   :  { %761 = vmatprep.subr.bf16.mxu1 %v882_v16 }
  0x60   :  { %809 = vmatpush3.bf16.msra.mxu0 %v892_v27  ;;  %v733_v27 = vld [vmem:[%s1220_s8] ss:$0 sm:$0xff] }
  0x61   :  { %762 = vmatpush3.bf16.msra.mxu1 %v883_v17  ;;  %810 = vmatprep.subr.bf16.mxu0 %v1013_v23 }
  0x62   :  { %763 = vmatprep.subr.bf16.mxu1 %v884_v18 }
  0x64   :  { %811 = vmatpush3.bf16.msra.mxu0 %v893_v49 }
  0x65   :  { %764 = vmatpush3.bf16.msra.mxu1 %v885_v19  ;;  %812 = vmatprep.subr.bf16.mxu0 %v1013_v23 }
  0x66   :  { %765 = vmatprep.subr.bf16.mxu1 %v886_v20 }
  0x68   :  { %813 = vmatpush3.bf16.msra.mxu0 %v894_v50 }
  0x69   :  { %766 = vmatpush3.bf16.msra.mxu1 %v887_v21  ;;  %814 = vmatprep.subr.bf16.mxu0 %v1013_v23 }
  0x6a   :  { %820 = vmatprep.subr.bf16.mxu1 %v1013_v23 }
  0x6c   :  { %815 = vmatpush3.bf16.msra.mxu0 %v895_v51 }
  0x6d   :  { %840 = vmatprep.subr.bf16.mxu0 %v1013_v23 }
 0x120   :  { %v159_v35 = vpop.f32.mrb[0].mxu0 }
 0x121   :  { %v160_v36 = vadd.f32 %v159_v35, %v104_v33  ;;  %v161_v37 = vpop.f32.mrb[1].mxu0 }
 0x122   :  { %v162_v38 = vadd.f32 %v161_v37, %v108_v34  ;;  %v163_v39 = vpop.f32.mrb[2].mxu0 }
 0x123   :  { %v164_v40 = vadd.f32 %v163_v39, %v104_v33  ;;  %v165_v41 = vpop.f32.mrb[3].mxu0  ;;  %v168_v43 = vmax.f32 %v160_v36, 0.0 }
 0x124   :  { %v166_v42 = vadd.f32 %v165_v41, %v108_v34  ;;  %v169_v45 = vmax.f32 %v162_v38, 0.0 }
 0x125   :  { %v170_v44 = vmax.f32 %v164_v40, 0.0 }
 0x126   :  { %v171_v46 = vmax.f32 %v166_v42, 0.0 }
 0x127   :  { %v172_v47 = vpack.c.bf16 %v170_v44, %v168_v43 }
 0x128   :  { %v173_v48 = vpack.c.bf16 %v171_v46, %v169_v45 }
 0x12a   :  { %341 = vmatprep.mubr.bf16.mxu1 %v173_v48 }
 0x12b   :  { %342 = vmatmul.mubr.bf16.vlgmr.msra.gmra.mrb[0].mxu1 %v172_v47 }
 0x12c   :  { %836 = vmatprep.mubr.msk.bf16.mxu1 %vm1014_vm1, %v1013_v23  ;;  %821 = vmatpush3.bf16.msra.mxu1 %v896_v52 }
 0x12d   :  { %822 = vmatprep.subr.bf16.mxu1 %v1013_v23 }
 0x130   :  { %823 = vmatpush3.bf16.msra.mxu1 %v897_v53 }
 0x131   :  { %824 = vmatprep.subr.bf16.mxu1 %v1013_v23 }
 0x134   :  { %825 = vmatpush3.bf16.msra.mxu1 %v898_v54 }
 0x135   :  { %826 = vmatprep.subr.bf16.mxu1 %v1013_v23 }
 0x138   :  { %827 = vmatpush3.bf16.msra.mxu1 %v899_v55 }
 0x139   :  { %828 = vmatprep.subr.bf16.mxu1 %v1013_v23 }
 0x13c   :  { %829 = vmatpush3.bf16.msra.mxu1 %v900_v56 }
 0x13d   :  { %830 = vmatprep.subr.bf16.mxu1 %v1013_v23 }
 0x140   :  { %831 = vmatpush3.bf16.msra.mxu1 %v901_v57 }
 0x141   :  { %832 = vmatprep.subr.bf16.mxu1 %v1013_v23 }
 0x144   :  { %833 = vmatpush3.bf16.msra.mxu1 %v902_v6 }
 0x145   :  { %834 = vmatprep.subr.bf16.mxu1 %v1013_v23 }
 0x148   :  { %835 = vmatpush3.bf16.msra.mxu1 %v903_v7 }
 0x1fe   :  { %v767_v58 = vpop.f32.mrb[0].mxu1 }
 0x1ff   :  { %v768_v60 = vpop.f32.mrb[1].mxu1 }
 0x200   :  { %v769_v61 = vadd.f32 %v768_v60, %v767_v58  ;;  %v770_v62 = vpop.f32.mrb[2].mxu1 }
 0x201   :  { %v771_v63 = vpop.f32.mrb[3].mxu1 }
 0x202   :  { %v344_v0 = vadd.f32 %v769_v61, %v707_v59  ;;  %v772_v1 = vadd.f32 %v771_v63, %v770_v62 }
 0x204   :  { %v347_v2 = vadd.f32 %v772_v1, %v707_v59  ;;  %v350_v3 = vmax.f32 %v344_v0, 0.0 }
 0x206   :  { %v351_v4 = vmax.f32 %v347_v2, 0.0 }
 0x208   :  { %v352_v5 = vpack.c.bf16 %v351_v4, %v350_v3 }
 0x20a   :  { %817 = vmatmul.mubr.bf16.vlgmr.msra.gmra.mrb[4].mxu0 %v352_v5 }
 0x20b   :  { %856 = vmatprep.mubr.msk.bf16.mxu0 %vm1014_vm1, %v1013_v23  ;;  %841 = vmatpush3.bf16.msra.mxu0 %v904_v8 }
 0x20c   :  { %842 = vmatprep.subr.bf16.mxu0 %v1013_v23 }
 0x20f   :  { %843 = vmatpush3.bf16.msra.mxu0 %v905_v9 }
 0x210   :  { %844 = vmatprep.subr.bf16.mxu0 %v1013_v23 }
 0x213   :  { %845 = vmatpush3.bf16.msra.mxu0 %v906_v10 }
 0x214   :  { %846 = vmatprep.subr.bf16.mxu0 %v1013_v23 }
 0x217   :  { %847 = vmatpush3.bf16.msra.mxu0 %v907_v11 }
 0x218   :  { %848 = vmatprep.subr.bf16.mxu0 %v1013_v23 }
 0x21b   :  { %849 = vmatpush3.bf16.msra.mxu0 %v908_v12 }
 0x21c   :  { %850 = vmatprep.subr.bf16.mxu0 %v1013_v23 }
 0x21f   :  { %851 = vmatpush3.bf16.msra.mxu0 %v909_v13 }
 0x220   :  { %852 = vmatprep.subr.bf16.mxu0 %v1013_v23 }
 0x223   :  { %853 = vmatpush3.bf16.msra.mxu0 %v910_v25 }
 0x224   :  { %854 = vmatprep.subr.bf16.mxu0 %v1013_v23  ;;  %v742_v23 = vld [vmem:[%s1222_s10] ss:$0 sm:$0xff] }
 0x227   :  { %855 = vmatpush3.bf16.msra.mxu0 %v911_v26 }
 0x2dd   :  { %v458_v15 = vpop.f32.mrb[4].mxu0 }
 0x2de   :  { %v459_v16 = vadd.f32 %v724_v14, %v458_v15  ;;  %v818_v17 = vpop.f32.mrb[5].mxu0 }
 0x2df   :  { %v461_v18 = vpop.f32.mrb[6].mxu0 }
 0x2e0   :  { %v462_v19 = vadd.f32 %v724_v14, %v461_v18  ;;  %v819_v20 = vpop.f32.mrb[7].mxu0  ;;  %v465_v21 = vmax.f32 %v459_v16, 0.0 }
 0x2e2   :  { %v466_v22 = vmax.f32 %v462_v19, 0.0 }
 0x2e4   :  { %v467_v24 = vpack.c.bf16 %v466_v22, %v465_v21 }
 0x2e6   :  { %837 = vmatmul.mubr.bf16.vlgmr.msra.gmra.mrb[4].mxu1 %v467_v24 }
 0x3b9   :  { %v573_v28 = vpop.f32.mrb[4].mxu1 }
 0x3ba   :  { %v574_v29 = vadd.f32 %v733_v27, %v573_v28  ;;  %v838_v30 = vpop.f32.mrb[5].mxu1 }
 0x3bb   :  { %v576_v31 = vpop.f32.mrb[6].mxu1 }
 0x3bc   :  { %v577_v32 = vadd.f32 %v733_v27, %v576_v31  ;;  %v839_v33 = vpop.f32.mrb[7].mxu1  ;;  %v580_v34 = vmax.f32 %v574_v29, 0.0 }
 0x3be   :  { %v581_v35 = vmax.f32 %v577_v32, 0.0 }
 0x3c0   :  { %v582_v36 = vpack.c.bf16 %v581_v35, %v580_v34 }
 0x3c2   :  { %857 = vmatmul.mubr.bf16.vlgmr.msra.gmra.mrb[8].mxu0 %v582_v36 }
 0x495   :  { %v688_v37 = vpop.f32.mrb[8].mxu0 }
 0x496   :  { %v689_v38 = vadd.f32 %v742_v23, %v688_v37  ;;  %v858_v39 = vpop.f32.mrb[9].mxu0 }
 0x497   :  { %v691_v40 = vpop.f32.mrb[10].mxu0 }
 0x498   :  { %695 = vst [vmem:[%s1223_s11] sm:$0xff] %v689_v38  ;;  %v692_v41 = vadd.f32 %v742_v23, %v691_v40  ;;  %v859_v42 = vpop.f32.mrb[11].mxu0 }
 0x49a   :  { %696 = vst [vmem:[%s1223_s11 + $0x8] sm:$0xff] %v692_v41 }
 0x49b   :  { %701 = vsyncpa [#allocation3], 1 }
 0x49c   :  { %702 = vsyncpa [#allocation5], 1 }
 0x49d   :  { %703 = vsyncpa [#allocation8], 1 }

</bundles_post_ra>
